<compile_context>
chip_gen: v7x
topology: tpu7x:2x2x1
jax: 0.10.0
libtpu: 0.0.40
codegen_flags: <defaults>
</compile_context>

<pallas_src>
import functools

import jax
import jax.numpy as jnp
from jax.experimental import pallas as pl
from jax.experimental.pallas import tpu as pltpu


# ----------------------------------------------------------------------------
# helpers
# ----------------------------------------------------------------------------
def _round_up(n, m):
    return ((n + m - 1) // m) * m


def _nbytes(*arrays):
    return int(sum(a.size * jnp.dtype(a.dtype).itemsize for a in arrays))


def _full_spec(a):
    nd = a.ndim
    return pl.BlockSpec(a.shape, lambda *args, _nd=nd: (0,) * _nd)


# ----------------------------------------------------------------------------
# Pallas kernels
# ----------------------------------------------------------------------------
def _fused_textcnn_kernel(x_ref, w_ref, b_ref, o_ref, *, filter_sizes,
                          num_filters):
    """Fused multi-filter-size text CNN: conv + bias + ReLU + global max-pool.

    x: (N, L, D) bf16; w: (D, sum(Ks)*Co) bf16 with tap weights stacked along
    columns; b: (1, len(Ks)*Co) f32;  o: (N, len(Ks)*Co) f32.

    Matches, for every filter size K:
        relu(Conv2d(1, Co, (K, D))(x)).squeeze(3) -> max_pool1d over time,
    with the per-filter outputs concatenated on the last (lane) axis.
    """
    N, L, D = x_ref.shape
    Co = num_filters
    T = sum(filter_sizes)

    # ONE bf16 MXU matmul on the unshifted input, f32 accumulation.
    y = jnp.dot(x_ref[...].reshape(N * L, D), w_ref[...],
                preferred_element_type=jnp.float32).reshape(N, L, T * Co)

    pooled = []
    tap = 0
    for K in filter_sizes:           # static, tiny -> unrolled
        Lout = L - K + 1
        # Shift/accumulate the SMALL (N, Lout, Co) result slices, not x.
        acc = y[:, 0:Lout, tap * Co:(tap + 1) * Co]
        tap += 1
        for k in range(1, K):
            acc = acc + y[:, k:k + Lout, tap * Co:(tap + 1) * Co]
            tap += 1
        pooled.append(jnp.max(acc, axis=1))          # (N, Co), pre-bias
    # max_t relu(acc_t + b) == relu(max_t(acc_t) + b): bias/ReLU after pooling.
    o_ref[...] = jnp.maximum(jnp.concatenate(pooled, axis=1) + b_ref[...], 0.0)


def _file_conv_head_kernel(xl_ref, wf_ref, bf_ref, xm_ref, tab_ref,
                           w1m_ref, w1c_ref, w1t_ref, b1_ref, w2_ref, b2_ref,
                           o_ref, *, filter_sizes, num_filters):
    """Fused tail: file-level convs + 'concat' combiner + fc1_2/ReLU/fc2/sigmoid.

    xl: (B, Fn, nK*Co) bf16 line-conv features; xm: (B, nK*Co) bf16 msg feats;
    tab: (B, cat+num) bf16; fc1_2 weight split by row blocks [msg|code|tab] so
    no in-kernel feature concatenation is needed; o: (B, Class) f32 probs.
    """
    B, Fn, Dl = xl_ref.shape
    Co = num_filters
    T = sum(filter_sizes)

    # file/hunk-level conv + bias + ReLU + max-pool over files (same scheme).
    y = jnp.dot(xl_ref[...].reshape(B * Fn, Dl), wf_ref[...],
                preferred_element_type=jnp.float32).reshape(B, Fn, T * Co)
    pooled = []
    tap = 0
    for K in filter_sizes:
        Lout = Fn - K + 1
        acc = y[:, 0:Lout, tap * Co:(tap + 1) * Co]
        tap += 1
        for k in range(1, K):
            acc = acc + y[:, k:k + Lout, tap * Co:(tap + 1) * Co]
            tap += 1
        pooled.append(jnp.max(acc, axis=1))
    x_code = jnp.maximum(jnp.concatenate(pooled, axis=1) + bf_ref[...], 0.0)

    # MLP head. concat([msg, code, cat, num]) @ W1 == sum of row-block matmuls.
    h = (jnp.dot(xm_ref[...], w1m_ref[...], preferred_element_type=jnp.float32)
         + jnp.dot(x_code.astype(jnp.bfloat16), w1c_ref[...],
                   preferred_element_type=jnp.float32)
         + jnp.dot(tab_ref[...], w1t_ref[...],
                   preferred_element_type=jnp.float32)
         + b1_ref[...])
    h = jnp.maximum(h, 0.0)
    logits = jnp.dot(h.astype(jnp.bfloat16), w2_ref[...],
                     preferred_element_type=jnp.float32) + b2_ref[...]
    o_ref[...] = jax.nn.sigmoid(logits)


# ----------------------------------------------------------------------------
# Pallas wrappers
# ----------------------------------------------------------------------------
def fused_conv_relu_maxpool(x, w_stacked, b_stacked, filter_sizes, num_filters,
                            *, row_block=128):
    """x: (N, L, D) -> (N, len(Ks)*Co) f32, one pallas_call for all filter sizes."""
    N, L, D = x.shape
    Co = num_filters
    nK = len(filter_sizes)
    T = sum(filter_sizes)
    Cout = nK * Co

    # Row-blocked grid (parallel) so large batches shard across v7x's 2 TCs.
    NB = min(row_block, _round_up(N, 8))
    Npad = _round_up(N, NB)
    if Npad != N:
        x = jnp.pad(x, ((0, Npad - N), (0, 0), (0, 0)))
    x = x.astype(jnp.bfloat16)       # halve HBM->VMEM DMA bytes, bf16 MXU input

    flops = 2 * Npad * L * D * T * Co
    bytes_accessed = _nbytes(x, w_stacked, b_stacked) + Npad * Cout * 4

    out = pl.pallas_call(
        functools.partial(_fused_textcnn_kernel, filter_sizes=filter_sizes,
                          num_filters=num_filters),
        out_shape=jax.ShapeDtypeStruct((Npad, Cout), jnp.float32),
        grid=(Npad // NB,),
        in_specs=[
            pl.BlockSpec((NB, L, D), lambda i: (i, 0, 0)),
            _full_spec(w_stacked),
            _full_spec(b_stacked),
        ],
        out_specs=pl.BlockSpec((NB, Cout), lambda i: (i, 0)),
        compiler_params=pltpu.CompilerParams(
            dimension_semantics=("parallel",),
            # sized against v7x's 64 MiB physical VMEM (safe on v5e/v6e too)
            vmem_limit_bytes=32 * 1024 * 1024,
        ),
        cost_estimate=pl.CostEstimate(flops=flops, transcendentals=0,
                                      bytes_accessed=bytes_accessed),
    )(x, w_stacked, b_stacked)
    return out[:N]


def fused_file_conv_and_head(x_line, w_file, b_file, x_msg, tab,
                             w1_msg, w1_code, w1_tab, b1, w2, b2,
                             filter_sizes, num_filters):
    """(B, Fn, nK*Co) line feats + msg/tab feats -> (B, Class) probabilities."""
    B, Fn, Dl = x_line.shape
    Co = num_filters
    T = sum(filter_sizes)
    Cout = len(filter_sizes) * Co
    H = w2.shape[0]
    C = w2.shape[1]
    Ftab = tab.shape[1]

    x_line = x_line.astype(jnp.bfloat16)
    x_msg = x_msg.astype(jnp.bfloat16)
    tab = tab.astype(jnp.bfloat16)

    flops = 2 * (B * Fn * Dl * T * Co + 2 * B * Cout * H + B * Ftab * H
                 + B * H * C)
    operands = (x_line, w_file, b_file, x_msg, tab,
                w1_msg, w1_code, w1_tab, b1, w2, b2)
    bytes_accessed = _nbytes(*operands) + B * C * 4

    return pl.pallas_call(
        functools.partial(_file_conv_head_kernel, filter_sizes=filter_sizes,
                          num_filters=num_filters),
        out_shape=jax.ShapeDtypeStruct((B, C), jnp.float32),
        grid=(1,),
        in_specs=[_full_spec(a) for a in operands],
        out_specs=pl.BlockSpec((B, C), lambda i: (0, 0)),
        compiler_params=pltpu.CompilerParams(
            dimension_semantics=("arbitrary",),
            vmem_limit_bytes=32 * 1024 * 1024,
        ),
        cost_estimate=pl.CostEstimate(flops=flops, transcendentals=B * C,
                                      bytes_accessed=bytes_accessed),
    )(*operands)


# ----------------------------------------------------------------------------
# DeepJIT model (parameters + forward), eval mode (dropout = identity)
# ----------------------------------------------------------------------------
class Args:
    vocab_msg = 50
    vocab_code = 60
    embedding_dim = 16
    class_num = 1
    num_filters = 8
    filter_sizes = (1, 2)
    hidden_units = 32
    dropout_keep_prob = 0.5           # eval mode -> identity
    combiner = "concat"               # tabular combiner = plain concatenation
    category_feat_dim = 4
    num_feat_dim = 9


def init_params(args, key):
    """Raw (PyTorch-layout-equivalent) parameters, every tensor its own key."""
    keys = iter(jax.random.split(key, 64))

    def w(shape, scale=0.1):
        return (scale * jax.random.normal(next(keys), shape)).astype(jnp.float32)

    D, Co, Ks = args.embedding_dim, args.num_filters, args.filter_sizes
    nK = len(Ks)
    feat = nK * Co                                   # per-branch conv feature dim
    combined = 2 * feat + args.category_feat_dim + args.num_feat_dim

    raw = {
        "embed_msg": w((args.vocab_msg, D)),
        "embed_code": w((args.vocab_code, D)),
        # conv weights stored (K, in_dim, Co)  (== Conv2d weight (Co,1,K,in_dim)
        # transposed), biases (1, Co)
        "convs_msg": [(w((K, D, Co)), w((1, Co))) for K in Ks],
        "convs_code_line": [(w((K, D, Co)), w((1, Co))) for K in Ks],
        "convs_code_file": [(w((K, feat, Co)), w((1, Co))) for K in Ks],
        "fc1_2_w": w((combined, args.hidden_units)),
        "fc1_2_b": w((1, args.hidden_units)),
        "fc2_w": w((args.hidden_units, args.class_num)),
        "fc2_b": w((1, args.class_num)),
        # eval-mode BatchNorm1d on numerical feats (fresh running stats; with a
        # real checkpoint these would be the loaded running mean/var).
        "bn_mean": jnp.zeros((args.num_feat_dim,), jnp.float32),
        "bn_var": jnp.ones((args.num_feat_dim,), jnp.float32),
        "bn_gamma": jnp.ones((args.num_feat_dim,), jnp.float32),
        "bn_beta": jnp.zeros((args.num_feat_dim,), jnp.float32),
    }
    return raw


def pack_params(raw, args):
    """Pack raw params into the fused-kernel layout (stacked taps, bf16 weights)."""
    Ks, Co = args.filter_sizes, args.num_filters
    feat = len(Ks) * Co

    def pack_bank(bank):
        taps, biases = [], []
        for (wk, bk) in bank:                         # wk: (K, Din, Co)
            for k in range(wk.shape[0]):
                taps.append(wk[k])                    # (Din, Co)
            biases.append(bk)
        w_stacked = jnp.concatenate(taps, axis=1).astype(jnp.bfloat16)
        b_stacked = jnp.concatenate(biases, axis=1).astype(jnp.float32)
        return (w_stacked, b_stacked)

    w1 = raw["fc1_2_w"]                               # (2*feat + cat + num, H)
    return {
        "embed_msg": raw["embed_msg"],
        "embed_code": raw["embed_code"],
        "msg": pack_bank(raw["convs_msg"]),
        "line": pack_bank(raw["convs_code_line"]),
        "file": pack_bank(raw["convs_code_file"]),
        "w1_msg": w1[:feat].astype(jnp.bfloat16),
        "w1_code": w1[feat:2 * feat].astype(jnp.bfloat16),
        "w1_tab": w1[2 * feat:].astype(jnp.bfloat16),
        "b1": raw["fc1_2_b"],
        "w2": raw["fc2_w"].astype(jnp.bfloat16),
        "b2": raw["fc2_b"],
        "bn_mean": raw["bn_mean"], "bn_var": raw["bn_var"],
        "bn_gamma": raw["bn_gamma"], "bn_beta": raw["bn_beta"],
    }


def deepjit_forward(params, args, msg, code, cat_feats, numerical_feats, labels):
    del labels  # unused in the PyTorch forward as well
    Ks, Co = args.filter_sizes, args.num_filters
    feat = len(Ks) * Co

    # ---- message branch: embed + fused conv/relu/maxpool (1 pallas_call) ----
    x_msg = jnp.take(params["embed_msg"], msg, axis=0)             # (B, Lm, D)
    x_msg = fused_conv_relu_maxpool(x_msg, *params["msg"], Ks, Co)  # (B, feat)

    # ---- code branch: line-level convs (1 pallas_call over B*Fn rows) -------
    B, Fn, Lc = code.shape
    x_code = jnp.take(params["embed_code"], code, axis=0)          # (B,Fn,Lc,D)
    x_line = fused_conv_relu_maxpool(
        x_code.reshape(B * Fn, Lc, args.embedding_dim), *params["line"], Ks, Co)
    x_line = x_line.reshape(B, Fn, feat)                           # (B, Fn, feat)

    # ---- tabular glue (tiny, plain JAX): eval-mode BN + 'concat' combiner ---
    numerical_feats = numerical_feats.astype(jnp.float32)
    cat_feats = cat_feats.astype(jnp.float32)
    num_bn = ((numerical_feats - params["bn_mean"])
              * jax.lax.rsqrt(params["bn_var"] + 1e-5)) * params["bn_gamma"] \
             + params["bn_beta"]
    tab = jnp.concatenate([cat_feats, num_bn], axis=1)             # (B, cat+num)
    # dropout -> identity in eval mode.

    # ---- fused tail: file convs + combiner + MLP head (1 pallas_call) -------
    out = fused_file_conv_and_head(
        x_line, *params["file"], x_msg, tab,
        params["w1_msg"], params["w1_code"], params["w1_tab"], params["b1"],
        params["w2"], params["b2"], Ks, Co)                        # (B, 1)
    return out[:, 0]                                               # (B,)

# TODO(synk): TabularFeatCombiner / TabularConfig / TransformerWrapper sources
# were not provided; only the 'concat' combiner mode is implemented (matching
# args.combiner == 'concat').  fc1, cat_transformer and pooler are unused in
# the reference forward and are therefore omitted.


# ----------------------------------------------------------------------------
# Pure-JAX reference (mirrors the PyTorch forward, f32) for a correctness check
# ----------------------------------------------------------------------------
def _ref_branch(x, bank):
    outs = []
    for (wk, bk) in bank:
        K, _, Co = wk.shape
        Lout = x.shape[1] - K + 1
        acc = jnp.zeros((x.shape[0], Lout, Co), jnp.float32)
        for k in range(K):
            acc = acc + jnp.einsum("nld,dc->nlc", x[:, k:k + Lout, :], wk[k])
        acc = jnp.maximum(acc + bk[None, :, :], 0.0)
        outs.append(jnp.max(acc, axis=1))
    return jnp.concatenate(outs, axis=1)


def reference_forward(raw, args, msg, code, cat_feats, numerical_feats):
    xm = _ref_branch(jnp.take(raw["embed_msg"], msg, axis=0), raw["convs_msg"])
    B, Fn, Lc = code.shape
    xc = jnp.take(raw["embed_code"], code, axis=0).reshape(B * Fn, Lc, -1)
    xc = _ref_branch(xc, raw["convs_code_line"]).reshape(B, Fn, -1)
    xc = _ref_branch(xc, raw["convs_code_file"])
    num = ((numerical_feats.astype(jnp.float32) - raw["bn_mean"])
           / jnp.sqrt(raw["bn_var"] + 1e-5)) * raw["bn_gamma"] + raw["bn_beta"]
    comb = jnp.concatenate([xm, xc, cat_feats.astype(jnp.float32), num], axis=1)
    h = jnp.maximum(comb @ raw["fc1_2_w"] + raw["fc1_2_b"], 0.0)
    return jax.nn.sigmoid(h @ raw["fc2_w"] + raw["fc2_b"])[:, 0]


# ----------------------------------------------------------------------------
if __name__ == "__main__":
    args = Args()
    key = jax.random.PRNGKey(0)
    kp, k1, k2, k3, k4 = jax.random.split(key, 5)

    raw = init_params(args, kp)
    params = pack_params(raw, args)

    B, Lm, Fn, Lc = 2, 16, 4, 8
    msg = jax.random.randint(k1, (B, Lm), 0, args.vocab_msg, dtype=jnp.int32)
    code = jax.random.randint(k2, (B, Fn, Lc), 0, args.vocab_code,
                              dtype=jnp.int32)
    cat_feats = jax.random.normal(k3, (B, args.category_feat_dim),
                                  dtype=jnp.float32)
    numerical_feats = jax.random.normal(k4, (B, args.num_feat_dim),
                                        dtype=jnp.float32)
    labels = jnp.zeros((B,), jnp.float32)

    fwd = jax.jit(functools.partial(deepjit_forward, params, args))
    out = jax.block_until_ready(fwd(msg, code, cat_feats, numerical_feats,
                                    labels))
    assert out.shape == (B,), out.shape
    assert bool(jnp.all(jnp.isfinite(out)))

    # numeric sanity check vs. the plain-JAX (f32) reference; bf16 MXU inputs
    # introduce only tiny deviations at these magnitudes.
    ref = reference_forward(raw, args, msg, code, cat_feats, numerical_feats)
    max_diff = float(jnp.max(jnp.abs(out - ref)))
    assert max_diff < 5e-2, (max_diff, out, ref)

    print("KERNEL_OK")
</pallas_src>

<mosaic_0001>
module attributes {stable_mosaic.version = 11 : i64} {
  func.func @_fused_textcnn_kernel(%arg0: i32, %arg1: memref<8x16x16xbf16, #tpu.memory_space<vmem>>, %arg2: memref<16x24xbf16, #tpu.memory_space<vmem>>, %arg3: memref<1x16xf32, #tpu.memory_space<vmem>>, %arg4: memref<8x16xf32, #tpu.memory_space<vmem>>) attributes {dimension_semantics = [#tpu.dimension_semantics<parallel>], iteration_bounds = array<i64: 1>, scalar_prefetch = 0 : i64, scratch_operands = 0 : i64, tpu.core_type = #tpu.core_type<tc>, window_params = [{transform_indices = @transform_0, window_bounds = array<i64: 8, 16, 16>}, {pipeline_mode = #tpu.pipeline_mode<synchronous>, transform_indices = @transform_1, window_bounds = array<i64: 16, 24>}, {pipeline_mode = #tpu.pipeline_mode<synchronous>, transform_indices = @transform_2, window_bounds = array<i64: 1, 16>}, {transform_indices = @transform_3, window_bounds = array<i64: 8, 16>}]} {
    %c0 = arith.constant 0 : index
    %c0_0 = arith.constant 0 : index
    %c0_1 = arith.constant 0 : index
    %0 = vector.load %arg1[%c0, %c0_0, %c0_1] : memref<8x16x16xbf16, #tpu.memory_space<vmem>>, vector<8x16x16xbf16>
    %1 = vector.shape_cast %0 : vector<8x16x16xbf16> to vector<128x16xbf16>
    %c0_2 = arith.constant 0 : index
    %c0_3 = arith.constant 0 : index
    %2 = vector.load %arg2[%c0_2, %c0_3] : memref<16x24xbf16, #tpu.memory_space<vmem>>, vector<16x24xbf16>
    %cst = arith.constant dense<0.000000e+00> : vector<128x24xf32>
    %3 = tpu.matmul %1, %2, %cst {dimension_numbers = #tpu.dot_dimension_numbers<[1], [0], [0], [1], [0, 0, 1, 1], [], []>} : vector<128x16xbf16>, vector<16x24xbf16>, vector<128x24xf32> -> vector<128x24xf32>
    %4 = vector.shape_cast %3 : vector<128x24xf32> to vector<8x16x24xf32>
    %5 = vector.extract_strided_slice %4 {offsets = [0, 0, 0], sizes = [8, 16, 8], strides = [1, 1, 1]} : vector<8x16x24xf32> to vector<8x16x8xf32>
    %cst_4 = arith.constant dense<0xFF800000> : vector<8x8xf32>
    %6 = vector.multi_reduction <maximumf>, %5, %cst_4 [1] : vector<8x16x8xf32> to vector<8x8xf32>
    %7 = vector.extract_strided_slice %4 {offsets = [0, 0, 8], sizes = [8, 15, 8], strides = [1, 1, 1]} : vector<8x16x24xf32> to vector<8x15x8xf32>
    %8 = vector.extract_strided_slice %4 {offsets = [0, 1, 16], sizes = [8, 15, 8], strides = [1, 1, 1]} : vector<8x16x24xf32> to vector<8x15x8xf32>
    %9 = arith.addf %7, %8 : vector<8x15x8xf32>
    %cst_5 = arith.constant dense<0xFF800000> : vector<8x8xf32>
    %10 = vector.multi_reduction <maximumf>, %9, %cst_5 [1] : vector<8x15x8xf32> to vector<8x8xf32>
    %11 = tpu.concatenate %6, %10 in 1 : vector<8x8xf32>, vector<8x8xf32> -> vector<8x16xf32>
    %c0_6 = arith.constant 0 : index
    %c0_7 = arith.constant 0 : index
    %12 = vector.load %arg3[%c0_6, %c0_7] : memref<1x16xf32, #tpu.memory_space<vmem>>, vector<1x16xf32>
    %13 = vector.broadcast %12 : vector<1x16xf32> to vector<8x16xf32>
    %14 = arith.addf %11, %13 : vector<8x16xf32>
    %cst_8 = arith.constant 0.000000e+00 : f32
    %15 = vector.broadcast %cst_8 : f32 to vector<8x16xf32>
    %16 = arith.maximumf %14, %15 : vector<8x16xf32>
    %c0_9 = arith.constant 0 : index
    %c0_10 = arith.constant 0 : index
    %17 = vector.load %arg4[%c0_9, %c0_10] : memref<8x16xf32, #tpu.memory_space<vmem>>, vector<8x16xf32>
    tpu.vector_store %arg4[%c0_9, %c0_10], %16 {strides = array<i32>} : memref<8x16xf32, #tpu.memory_space<vmem>>, vector<8x16xf32>,
    return
  }
  func.func @transform_0(%arg0: i32) -> (i32, i32, i32) {
    %c0_i32 = arith.constant 0 : i32
    %c0_i32_0 = arith.constant 0 : i32
    %c0_i32_1 = arith.constant 0 : i32
    return %arg0, %c0_i32, %c0_i32_0 : i32, i32, i32
  }
  func.func @transform_1(%arg0: i32) -> (i32, i32) {
    %c0_i32 = arith.constant 0 : i32
    %c0_i32_0 = arith.constant 0 : i32
    %c0_i32_1 = arith.constant 0 : i32
    return %c0_i32, %c0_i32_0 : i32, i32
  }
  func.func @transform_2(%arg0: i32) -> (i32, i32) {
    %c0_i32 = arith.constant 0 : i32
    %c0_i32_0 = arith.constant 0 : i32
    %c0_i32_1 = arith.constant 0 : i32
    return %c0_i32, %c0_i32_0 : i32, i32
  }
  func.func @transform_3(%arg0: i32) -> (i32, i32) {
    %c0_i32 = arith.constant 0 : i32
    %c0_i32_0 = arith.constant 0 : i32
    return %arg0, %c0_i32 : i32, i32
  }
}

module attributes {stable_mosaic.version = 11 : i64} {
  func.func @_fused_textcnn_kernel(%arg0: i32, %arg1: memref<8x8x16xbf16, #tpu.memory_space<vmem>>, %arg2: memref<16x24xbf16, #tpu.memory_space<vmem>>, %arg3: memref<1x16xf32, #tpu.memory_space<vmem>>, %arg4: memref<8x16xf32, #tpu.memory_space<vmem>>) attributes {dimension_semantics = [#tpu.dimension_semantics<parallel>], iteration_bounds = array<i64: 1>, scalar_prefetch = 0 : i64, scratch_operands = 0 : i64, tpu.core_type = #tpu.core_type<tc>, window_params = [{transform_indices = @transform_0, window_bounds = array<i64: 8, 8, 16>}, {pipeline_mode = #tpu.pipeline_mode<synchronous>, transform_indices = @transform_1, window_bounds = array<i64: 16, 24>}, {pipeline_mode = #tpu.pipeline_mode<synchronous>, transform_indices = @transform_2, window_bounds = array<i64: 1, 16>}, {transform_indices = @transform_3, window_bounds = array<i64: 8, 16>}]} {
    %c0 = arith.constant 0 : index
    %c0_0 = arith.constant 0 : index
    %c0_1 = arith.constant 0 : index
    %0 = vector.load %arg1[%c0, %c0_0, %c0_1] : memref<8x8x16xbf16, #tpu.memory_space<vmem>>, vector<8x8x16xbf16>
    %1 = vector.shape_cast %0 : vector<8x8x16xbf16> to vector<64x16xbf16>
    %c0_2 = arith.constant 0 : index
    %c0_3 = arith.constant 0 : index
    %2 = vector.load %arg2[%c0_2, %c0_3] : memref<16x24xbf16, #tpu.memory_space<vmem>>, vector<16x24xbf16>
    %cst = arith.constant dense<0.000000e+00> : vector<64x24xf32>
    %3 = tpu.matmul %1, %2, %cst {dimension_numbers = #tpu.dot_dimension_numbers<[1], [0], [0], [1], [0, 0, 1, 1], [], []>} : vector<64x16xbf16>, vector<16x24xbf16>, vector<64x24xf32> -> vector<64x24xf32>
    %4 = vector.shape_cast %3 : vector<64x24xf32> to vector<8x8x24xf32>
    %5 = vector.extract_strided_slice %4 {offsets = [0, 0, 0], sizes = [8, 8, 8], strides = [1, 1, 1]} : vector<8x8x24xf32> to vector<8x8x8xf32>
    %cst_4 = arith.constant dense<0xFF800000> : vector<8x8xf32>
    %6 = vector.multi_reduction <maximumf>, %5, %cst_4 [1] : vector<8x8x8xf32> to vector<8x8xf32>
    %7 = vector.extract_strided_slice %4 {offsets = [0, 0, 8], sizes = [8, 7, 8], strides = [1, 1, 1]} : vector<8x8x24xf32> to vector<8x7x8xf32>
    %8 = vector.extract_strided_slice %4 {offsets = [0, 1, 16], sizes = [8, 7, 8], strides = [1, 1, 1]} : vector<8x8x24xf32> to vector<8x7x8xf32>
    %9 = arith.addf %7, %8 : vector<8x7x8xf32>
    %cst_5 = arith.constant dense<0xFF800000> : vector<8x8xf32>
    %10 = vector.multi_reduction <maximumf>, %9, %cst_5 [1] : vector<8x7x8xf32> to vector<8x8xf32>
    %11 = tpu.concatenate %6, %10 in 1 : vector<8x8xf32>, vector<8x8xf32> -> vector<8x16xf32>
    %c0_6 = arith.constant 0 : index
    %c0_7 = arith.constant 0 : index
    %12 = vector.load %arg3[%c0_6, %c0_7] : memref<1x16xf32, #tpu.memory_space<vmem>>, vector<1x16xf32>
    %13 = vector.broadcast %12 : vector<1x16xf32> to vector<8x16xf32>
    %14 = arith.addf %11, %13 : vector<8x16xf32>
    %cst_8 = arith.constant 0.000000e+00 : f32
    %15 = vector.broadcast %cst_8 : f32 to vector<8x16xf32>
    %16 = arith.maximumf %14, %15 : vector<8x16xf32>
    %c0_9 = arith.constant 0 : index
    %c0_10 = arith.constant 0 : index
    %17 = vector.load %arg4[%c0_9, %c0_10] : memref<8x16xf32, #tpu.memory_space<vmem>>, vector<8x16xf32>
    tpu.vector_store %arg4[%c0_9, %c0_10], %16 {strides = array<i32>} : memref<8x16xf32, #tpu.memory_space<vmem>>, vector<8x16xf32>,
    return
  }
  func.func @transform_0(%arg0: i32) -> (i32, i32, i32) {
    %c0_i32 = arith.constant 0 : i32
    %c0_i32_0 = arith.constant 0 : i32
    %c0_i32_1 = arith.constant 0 : i32
    return %arg0, %c0_i32, %c0_i32_0 : i32, i32, i32
  }
  func.func @transform_1(%arg0: i32) -> (i32, i32) {
    %c0_i32 = arith.constant 0 : i32
    %c0_i32_0 = arith.constant 0 : i32
    %c0_i32_1 = arith.constant 0 : i32
    return %c0_i32, %c0_i32_0 : i32, i32
  }
  func.func @transform_2(%arg0: i32) -> (i32, i32) {
    %c0_i32 = arith.constant 0 : i32
    %c0_i32_0 = arith.constant 0 : i32
    %c0_i32_1 = arith.constant 0 : i32
    return %c0_i32, %c0_i32_0 : i32, i32
  }
  func.func @transform_3(%arg0: i32) -> (i32, i32) {
    %c0_i32 = arith.constant 0 : i32
    %c0_i32_0 = arith.constant 0 : i32
    return %arg0, %c0_i32 : i32, i32
  }
}

module attributes {stable_mosaic.version = 11 : i64} {
  func.func @_file_conv_head_kernel(%arg0: i32, %arg1: memref<2x4x16xbf16, #tpu.memory_space<vmem>>, %arg2: memref<16x24xbf16, #tpu.memory_space<vmem>>, %arg3: memref<1x16xf32, #tpu.memory_space<vmem>>, %arg4: memref<2x16xbf16, #tpu.memory_space<vmem>>, %arg5: memref<2x13xbf16, #tpu.memory_space<vmem>>, %arg6: memref<16x32xbf16, #tpu.memory_space<vmem>>, %arg7: memref<16x32xbf16, #tpu.memory_space<vmem>>, %arg8: memref<13x32xbf16, #tpu.memory_space<vmem>>, %arg9: memref<1x32xf32, #tpu.memory_space<vmem>>, %arg10: memref<32x1xbf16, #tpu.memory_space<vmem>>, %arg11: memref<1x1xf32, #tpu.memory_space<vmem>>, %arg12: memref<2x1xf32, #tpu.memory_space<vmem>>) attributes {dimension_semantics = [#tpu.dimension_semantics<arbitrary>], iteration_bounds = array<i64: 1>, scalar_prefetch = 0 : i64, scratch_operands = 0 : i64, tpu.core_type = #tpu.core_type<tc>, window_params = [{pipeline_mode = #tpu.pipeline_mode<synchronous>, transform_indices = @transform_0, window_bounds = array<i64: 2, 4, 16>}, {pipeline_mode = #tpu.pipeline_mode<synchronous>, transform_indices = @transform_1, window_bounds = array<i64: 16, 24>}, {pipeline_mode = #tpu.pipeline_mode<synchronous>, transform_indices = @transform_2, window_bounds = array<i64: 1, 16>}, {pipeline_mode = #tpu.pipeline_mode<synchronous>, transform_indices = @transform_3, window_bounds = array<i64: 2, 16>}, {pipeline_mode = #tpu.pipeline_mode<synchronous>, transform_indices = @transform_4, window_bounds = array<i64: 2, 13>}, {pipeline_mode = #tpu.pipeline_mode<synchronous>, transform_indices = @transform_5, window_bounds = array<i64: 16, 32>}, {pipeline_mode = #tpu.pipeline_mode<synchronous>, transform_indices = @transform_6, window_bounds = array<i64: 16, 32>}, {pipeline_mode = #tpu.pipeline_mode<synchronous>, transform_indices = @transform_7, window_bounds = array<i64: 13, 32>}, {pipeline_mode = #tpu.pipeline_mode<synchronous>, transform_indices = @transform_8, window_bounds = array<i64: 1, 32>}, {pipeline_mode = #tpu.pipeline_mode<synchronous>, transform_indices = @transform_9, window_bounds = array<i64: 32, 1>}, {pipeline_mode = #tpu.pipeline_mode<synchronous>, transform_indices = @transform_10, window_bounds = array<i64: 1, 1>}, {pipeline_mode = #tpu.pipeline_mode<synchronous>, transform_indices = @transform_11, window_bounds = array<i64: 2, 1>}]} {
    %c0 = arith.constant 0 : index
    %c0_0 = arith.constant 0 : index
    %c0_1 = arith.constant 0 : index
    %0 = vector.load %arg1[%c0, %c0_0, %c0_1] : memref<2x4x16xbf16, #tpu.memory_space<vmem>>, vector<2x4x16xbf16>
    %1 = vector.shape_cast %0 : vector<2x4x16xbf16> to vector<8x16xbf16>
    %c0_2 = arith.constant 0 : index
    %c0_3 = arith.constant 0 : index
    %2 = vector.load %arg2[%c0_2, %c0_3] : memref<16x24xbf16, #tpu.memory_space<vmem>>, vector<16x24xbf16>
    %cst = arith.constant dense<0.000000e+00> : vector<8x24xf32>
    %3 = tpu.matmul %1, %2, %cst {dimension_numbers = #tpu.dot_dimension_numbers<[1], [0], [0], [1], [0, 0, 1, 1], [], []>} : vector<8x16xbf16>, vector<16x24xbf16>, vector<8x24xf32> -> vector<8x24xf32>
    %4 = vector.shape_cast %3 : vector<8x24xf32> to vector<2x4x24xf32>
    %5 = vector.extract_strided_slice %4 {offsets = [0, 0, 0], sizes = [2, 4, 8], strides = [1, 1, 1]} : vector<2x4x24xf32> to vector<2x4x8xf32>
    %cst_4 = arith.constant dense<0xFF800000> : vector<2x8xf32>
    %6 = vector.multi_reduction <maximumf>, %5, %cst_4 [1] : vector<2x4x8xf32> to vector<2x8xf32>
    %7 = vector.extract_strided_slice %4 {offsets = [0, 0, 8], sizes = [2, 3, 8], strides = [1, 1, 1]} : vector<2x4x24xf32> to vector<2x3x8xf32>
    %8 = vector.extract_strided_slice %4 {offsets = [0, 1, 16], sizes = [2, 3, 8], strides = [1, 1, 1]} : vector<2x4x24xf32> to vector<2x3x8xf32>
    %9 = arith.addf %7, %8 : vector<2x3x8xf32>
    %cst_5 = arith.constant dense<0xFF800000> : vector<2x8xf32>
    %10 = vector.multi_reduction <maximumf>, %9, %cst_5 [1] : vector<2x3x8xf32> to vector<2x8xf32>
    %11 = tpu.concatenate %6, %10 in 1 : vector<2x8xf32>, vector<2x8xf32> -> vector<2x16xf32>
    %c0_6 = arith.constant 0 : index
    %c0_7 = arith.constant 0 : index
    %12 = vector.load %arg3[%c0_6, %c0_7] : memref<1x16xf32, #tpu.memory_space<vmem>>, vector<1x16xf32>
    %13 = vector.broadcast %12 : vector<1x16xf32> to vector<2x16xf32>
    %14 = arith.addf %11, %13 : vector<2x16xf32>
    %cst_8 = arith.constant 0.000000e+00 : f32
    %15 = vector.broadcast %cst_8 : f32 to vector<2x16xf32>
    %16 = arith.maximumf %14, %15 : vector<2x16xf32>
    %c0_9 = arith.constant 0 : index
    %c0_10 = arith.constant 0 : index
    %17 = vector.load %arg4[%c0_9, %c0_10] : memref<2x16xbf16, #tpu.memory_space<vmem>>, vector<2x16xbf16>
    %c0_11 = arith.constant 0 : index
    %c0_12 = arith.constant 0 : index
    %18 = vector.load %arg6[%c0_11, %c0_12] : memref<16x32xbf16, #tpu.memory_space<vmem>>, vector<16x32xbf16>
    %cst_13 = arith.constant dense<0.000000e+00> : vector<2x32xf32>
    %19 = tpu.matmul %17, %18, %cst_13 {dimension_numbers = #tpu.dot_dimension_numbers<[1], [0], [0], [1], [0, 0, 1, 1], [], []>} : vector<2x16xbf16>, vector<16x32xbf16>, vector<2x32xf32> -> vector<2x32xf32>
    %20 = arith.truncf %16 : vector<2x16xf32> to vector<2x16xbf16>
    %c0_14 = arith.constant 0 : index
    %c0_15 = arith.constant 0 : index
    %21 = vector.load %arg7[%c0_14, %c0_15] : memref<16x32xbf16, #tpu.memory_space<vmem>>, vector<16x32xbf16>
    %cst_16 = arith.constant dense<0.000000e+00> : vector<2x32xf32>
    %22 = tpu.matmul %20, %21, %cst_16 {dimension_numbers = #tpu.dot_dimension_numbers<[1], [0], [0], [1], [0, 0, 1, 1], [], []>} : vector<2x16xbf16>, vector<16x32xbf16>, vector<2x32xf32> -> vector<2x32xf32>
    %23 = arith.addf %19, %22 : vector<2x32xf32>
    %c0_17 = arith.constant 0 : index
    %c0_18 = arith.constant 0 : index
    %24 = vector.load %arg5[%c0_17, %c0_18] : memref<2x13xbf16, #tpu.memory_space<vmem>>, vector<2x13xbf16>
    %c0_19 = arith.constant 0 : index
    %c0_20 = arith.constant 0 : index
    %25 = vector.load %arg8[%c0_19, %c0_20] : memref<13x32xbf16, #tpu.memory_space<vmem>>, vector<13x32xbf16>
    %cst_21 = arith.constant dense<0.000000e+00> : vector<2x32xf32>
    %26 = tpu.matmul %24, %25, %cst_21 {dimension_numbers = #tpu.dot_dimension_numbers<[1], [0], [0], [1], [0, 0, 1, 1], [], []>} : vector<2x13xbf16>, vector<13x32xbf16>, vector<2x32xf32> -> vector<2x32xf32>
    %27 = arith.addf %23, %26 : vector<2x32xf32>
    %c0_22 = arith.constant 0 : index
    %c0_23 = arith.constant 0 : index
    %28 = vector.load %arg9[%c0_22, %c0_23] : memref<1x32xf32, #tpu.memory_space<vmem>>, vector<1x32xf32>
    %29 = vector.broadcast %28 : vector<1x32xf32> to vector<2x32xf32>
    %30 = arith.addf %27, %29 : vector<2x32xf32>
    %cst_24 = arith.constant 0.000000e+00 : f32
    %31 = vector.broadcast %cst_24 : f32 to vector<2x32xf32>
    %32 = arith.maximumf %30, %31 : vector<2x32xf32>
    %33 = arith.truncf %32 : vector<2x32xf32> to vector<2x32xbf16>
    %c0_25 = arith.constant 0 : index
    %c0_26 = arith.constant 0 : index
    %34 = vector.load %arg10[%c0_25, %c0_26] : memref<32x1xbf16, #tpu.memory_space<vmem>>, vector<32x1xbf16>
    %cst_27 = arith.constant dense<0.000000e+00> : vector<2x1xf32>
    %35 = tpu.matmul %33, %34, %cst_27 {dimension_numbers = #tpu.dot_dimension_numbers<[1], [0], [0], [1], [0, 0, 1, 1], [], []>} : vector<2x32xbf16>, vector<32x1xbf16>, vector<2x1xf32> -> vector<2x1xf32>
    %c0_28 = arith.constant 0 : index
    %c0_29 = arith.constant 0 : index
    %36 = vector.load %arg11[%c0_28, %c0_29] : memref<1x1xf32, #tpu.memory_space<vmem>>, vector<1x1xf32>
    %37 = vector.broadcast %36 : vector<1x1xf32> to vector<2x1xf32>
    %38 = arith.addf %35, %37 : vector<2x1xf32>
    %39 = arith.negf %38 : vector<2x1xf32>
    %40 = math.exp %39 : vector<2x1xf32>
    %cst_30 = arith.constant 1.000000e+00 : f32
    %41 = vector.broadcast %cst_30 : f32 to vector<2x1xf32>
    %42 = arith.addf %41, %40 : vector<2x1xf32>
    %43 = arith.divf %41, %42 : vector<2x1xf32>
    %c0_31 = arith.constant 0 : index
    %c0_32 = arith.constant 0 : index
    %44 = vector.load %arg12[%c0_31, %c0_32] : memref<2x1xf32, #tpu.memory_space<vmem>>, vector<2x1xf32>
    tpu.vector_store %arg12[%c0_31, %c0_32], %43 {strides = array<i32>} : memref<2x1xf32, #tpu.memory_space<vmem>>, vector<2x1xf32>,
    return
  }
  func.func @transform_0(%arg0: i32) -> (i32, i32, i32) {
    %c0_i32 = arith.constant 0 : i32
    %c0_i32_0 = arith.constant 0 : i32
    %c0_i32_1 = arith.constant 0 : i32
    %c0_i32_2 = arith.constant 0 : i32
    return %c0_i32, %c0_i32_0, %c0_i32_1 : i32, i32, i32
  }
  func.func @transform_1(%arg0: i32) -> (i32, i32) {
    %c0_i32 = arith.constant 0 : i32
    %c0_i32_0 = arith.constant 0 : i32
    %c0_i32_1 = arith.constant 0 : i32
    return %c0_i32, %c0_i32_0 : i32, i32
  }
  func.func @transform_2(%arg0: i32) -> (i32, i32) {
    %c0_i32 = arith.constant 0 : i32
    %c0_i32_0 = arith.constant 0 : i32
    %c0_i32_1 = arith.constant 0 : i32
    return %c0_i32, %c0_i32_0 : i32, i32
  }
  func.func @transform_3(%arg0: i32) -> (i32, i32) {
    %c0_i32 = arith.constant 0 : i32
    %c0_i32_0 = arith.constant 0 : i32
    %c0_i32_1 = arith.constant 0 : i32
    return %c0_i32, %c0_i32_0 : i32, i32
  }
  func.func @transform_4(%arg0: i32) -> (i32, i32) {
    %c0_i32 = arith.constant 0 : i32
    %c0_i32_0 = arith.constant 0 : i32
    %c0_i32_1 = arith.constant 0 : i32
    return %c0_i32, %c0_i32_0 : i32, i32
  }
  func.func @transform_5(%arg0: i32) -> (i32, i32) {
    %c0_i32 = arith.constant 0 : i32
    %c0_i32_0 = arith.constant 0 : i32
    %c0_i32_1 = arith.constant 0 : i32
    return %c0_i32, %c0_i32_0 : i32, i32
  }
  func.func @transform_6(%arg0: i32) -> (i32, i32) {
    %c0_i32 = arith.constant 0 : i32
    %c0_i32_0 = arith.constant 0 : i32
    %c0_i32_1 = arith.constant 0 : i32
    return %c0_i32, %c0_i32_0 : i32, i32
  }
  func.func @transform_7(%arg0: i32) -> (i32, i32) {
    %c0_i32 = arith.constant 0 : i32
    %c0_i32_0 = arith.constant 0 : i32
    %c0_i32_1 = arith.constant 0 : i32
    return %c0_i32, %c0_i32_0 : i32, i32
  }
  func.func @transform_8(%arg0: i32) -> (i32, i32) {
    %c0_i32 = arith.constant 0 : i32
    %c0_i32_0 = arith.constant 0 : i32
    %c0_i32_1 = arith.constant 0 : i32
    return %c0_i32, %c0_i32_0 : i32, i32
  }
  func.func @transform_9(%arg0: i32) -> (i32, i32) {
    %c0_i32 = arith.constant 0 : i32
    %c0_i32_0 = arith.constant 0 : i32
    %c0_i32_1 = arith.constant 0 : i32
    return %c0_i32, %c0_i32_0 : i32, i32
  }
  func.func @transform_10(%arg0: i32) -> (i32, i32) {
    %c0_i32 = arith.constant 0 : i32
    %c0_i32_0 = arith.constant 0 : i32
    %c0_i32_1 = arith.constant 0 : i32
    return %c0_i32, %c0_i32_0 : i32, i32
  }
  func.func @transform_11(%arg0: i32) -> (i32, i32) {
    %c0_i32 = arith.constant 0 : i32
    %c0_i32_0 = arith.constant 0 : i32
    %c0_i32_1 = arith.constant 0 : i32
    return %c0_i32, %c0_i32_0 : i32, i32
  }
}

</mosaic_0001>

<bundles_post_ra>
// kernel: deepjit_forward.4
= control target key start
LH: loop header
LB: loop body
LE: loop exit
PB: predicated region body
PF: predicated region fallthrough
CT: control target
= control target key end

     0   :  { %vm51_vm0 = vcmask 130048   ;;  %vm129_vm1 = vcmask 64512   ;;  %vm299_vm2 = vcmask 1041409   ;;  %vm301_vm3 = vcmask 1042434   ;;  %s507_s1 = inlined_call_operand.vmem [shape: bf16[16,24], index: 1, kind: input, shape index: {}]   ;;  %s508_s0 = inlined_call_operand.vmem [shape: bf16[8,8,16], index: 0, kind: input, shape index: {}]   ;;  %s509_s2 = inlined_call_operand.vmem [shape: f32[1,16], index: 2, kind: input, shape index: {}]   ;;  %s510_s3 = inlined_call_operand.vmem [shape: f32[8,16], index: 3, kind: output, shape index: {}]  }
   0x1   :  { %v373_v0 = vld [vmem:[%s507_s1] sm:$0xff]   ;;  %v375_v2 = vld [vmem:[%s508_s0 + $0x10] sm:$0xff]   ;;  %v376_v3 = vld [vmem:[%s508_s0 + $0x8] sm:$0xff]   ;;  %vm303_vm4 = vcmask 1043459   ;;  %vm305_vm5 = vcmask 1044484   ;;  %vm307_vm6 = vcmask 1045509  }
   0x2   :  { %v374_v1 = vld [vmem:[%s508_s0] sm:$0xff]   ;;  %360 = vmatprep.subr.bf16.mxu0 %v373_v0  ;;  %370 = vmatprep.subr.bf16.mxu1 %v373_v0  ;;  %v377_v4 = vld [vmem:[%s508_s0 + $0x18] sm:$0xff]   ;;  %s378_s0 = smov 120   ;;  %vm309_vm7 = vcmask 1046534   ;;  %vm311_vm8 = vcmask 1047559   ;;  %vm234_vm9 = vcmask 129088  }
   0x3   :  { %361 = vmatpush3.bf16.msra.mxu0 %v373_v0  ;;  %371 = vmatpush3.bf16.msra.mxu1 %v373_v0 }
   0x4   :  { %362 = vmatprep.mubr.msk.bf16.mxu0 %vm51_vm0, %v374_v1  ;;  %366 = vmatprep.mubr.msk.bf16.mxu1 %vm51_vm0, %v375_v2 }
   0x6   :  { %363 = vmatmul.mubr.msk.bf16.vlgmr.msra.gmra.mrb[0].mxu0 %vm51_vm0, %v376_v3  ;;  %367 = vmatmul.mubr.msk.bf16.vlgmr.msra.gmra.mrb[0].mxu1 %vm51_vm0, %v377_v4 }
  0xd9   :  { %v418_v5 = vpop.f32.mrb[0].mxu0  ;;  %v420_v6 = vpop.f32.mrb[0].mxu1 }
  0xda   :  { %v144_v7 = vsel %vm129_vm1, %v418_v5, -inf  ;;  %v424_v8 = vpop.f32.mrb[1].mxu0  ;;  %v426_v9 = vpop.f32.mrb[1].mxu1  ;;  %v196_v10 = vrot.slane %v418_v5, 1  ;;  %v172_v16 = vsel %vm129_vm1, %v420_v6, -inf }
  0xdb   :  { %v145_v11 = vrot.slane %v144_v7, 4  ;;  %v130_v12 = vsel %vm129_vm1, %v424_v8, -inf  ;;  %v158_v13 = vsel %vm129_vm1, %v426_v9, -inf  ;;  %v433_v14 = vpop.f32.mrb[2].mxu0  ;;  %v435_v15 = vpop.f32.mrb[2].mxu1  ;;  %v173_v27 = vrot.slane %v172_v16, 4 }
  0xdc   :  { %v131_v17 = vrot.slane %v130_v12, 4  ;;  %v151_v18 = vsel %vm129_vm1, %v433_v14, -inf  ;;  %v441_v19 = vpop.f32.mrb[3].mxu1  ;;  %206 = vrot.lane.b32.xlu1 %v196_v10, %s378_s0  ;;  %v444_v20 = vpop.f32.mrb[3].mxu0  ;;  %v159_v21 = vrot.slane %v158_v13, 4  ;;  %v197_v24 = vrot.slane %v433_v14, 1 }
  0xdd   :  { %v152_v22 = vrot.slane %v151_v18, 4  ;;  %v179_v25 = vsel %vm129_vm1, %v435_v15, -inf  ;;  %v146_v26 = vmax.f32 %v144_v7, %v145_v11  ;;  %v165_v30 = vsel %vm129_vm1, %v441_v19, -inf }
  0xde   :  { %v132_v23 = vmax.f32 %v130_v12, %v131_v17  ;;  %v180_v29 = vrot.slane %v179_v25, 4  ;;  %v199_v31 = vrot.slane %v441_v19, 1  ;;  %v160_v32 = vmax.f32 %v158_v13, %v159_v21 }
  0xdf   :  { %v153_v28 = vmax.f32 %v151_v18, %v152_v22  ;;  %v166_v34 = vrot.slane %v165_v30, 4  ;;  %v137_v35 = vsel %vm129_vm1, %v444_v20, -inf  ;;  %v147_v36 = vrot.slane %v146_v26, 2 }
  0xe0   :  { %208 = vrot.lane.b32.xlu1 %v197_v24, %s378_s0  ;;  %v133_v33 = vrot.slane %v132_v23, 2  ;;  %v174_v37 = vmax.f32 %v172_v16, %v173_v27  ;;  %v181_v39 = vmax.f32 %v179_v25, %v180_v29  ;;  %v138_v41 = vrot.slane %v137_v35, 4 }
  0xe1   :  { %v154_v38 = vrot.slane %v153_v28, 2  ;;  %v167_v40 = vmax.f32 %v165_v30, %v166_v34  ;;  %v161_v42 = vrot.slane %v160_v32, 2  ;;  %v201_v44 = vrot.slane %v435_v15, 1 }
  0xe2   :  { %v134_v43 = vmax.f32 %v132_v23, %v133_v33  ;;  %v139_v46 = vmax.f32 %v137_v35, %v138_v41  ;;  %v148_v47 = vmax.f32 %v146_v26, %v147_v36  ;;  %v175_v48 = vrot.slane %v174_v37, 2 }
  0xe3   :  { %v168_v45 = vrot.slane %v167_v40, 2  ;;  %v194_v49 = vrot.slane %v424_v8, 1  ;;  %v155_v50 = vmax.f32 %v153_v28, %v154_v38  ;;  %v182_v51 = vrot.slane %v181_v39, 2 }
  0xe4   :  { %212 = vrot.lane.b32.xlu1 %v199_v31, %s378_s0  ;;  %v140_v52 = vrot.slane %v139_v46, 2  ;;  %v162_v53 = vmax.f32 %v160_v32, %v161_v42  ;;  %v135_v54 = vrot.slane %v134_v43, 1  ;;  %v149_v57 = vrot.slane %v148_v47, 1 }
  0xe5   :  { %202 = vrot.lane.b32.xlu0 %v194_v49, %s378_s0  ;;  %v169_v55 = vmax.f32 %v167_v40, %v168_v45  ;;  %v176_v58 = vmax.f32 %v174_v37, %v175_v48  ;;  %v195_v59 = vrot.slane %v444_v20, 1  ;;  %v156_v60 = vrot.slane %v155_v50, 1 }
  0xe6   :  { %v141_v56 = vmax.f32 %v139_v46, %v140_v52  ;;  %v183_v61 = vmax.f32 %v181_v39, %v182_v51  ;;  %v163_v63 = vrot.slane %v162_v53, 1  ;;  %v136_v0 = vmax.f32 %v134_v43, %v135_v54 }
  0xe7   :  { %v170_v1 = vrot.slane %v169_v55, 1  ;;  %v150_v3 = vmax.f32 %v148_v47, %v149_v57  ;;  %v177_v4 = vrot.slane %v176_v58, 1  ;;  %v198_v7 = vrot.slane %v426_v9, 1 }
  0xe8   :  { %216 = vrot.lane.b32.xlu1 %v201_v44, %s378_s0  ;;  %v142_v62 = vrot.slane %v141_v56, 1  ;;  %v157_v10 = vmax.f32 %v155_v50, %v156_v60  ;;  %v184_v11 = vrot.slane %v183_v61, 1  ;;  %v164_v13 = vmax.f32 %v162_v53, %v163_v63 }
  0xe9   :  { %204 = vrot.lane.b32.xlu0 %v195_v59, %s378_s0  ;;  %v171_v17 = vmax.f32 %v169_v55, %v170_v1  ;;  %v178_v21 = vmax.f32 %v176_v58, %v177_v4  ;;  %v200_v22 = vrot.slane %v420_v6, 1 }
  0xea   :  { %v143_v2 = vmax.f32 %v141_v56, %v142_v62  ;;  %v185_v24 = vmax.f32 %v183_v61, %v184_v11 }
  0xec   :  { %v300_v12 = vsel %vm299_vm2, %v143_v2, %v136_v0 }
  0xed   :  { %v302_v16 = vsel %vm301_vm3, %v150_v3, %v300_v12  ;;  %210 = vrot.lane.b32.xlu0 %v198_v7, %s378_s0 }
  0xee   :  { %v304_v18 = vsel %vm303_vm4, %v157_v10, %v302_v16 }
  0xef   :  { %v306_v23 = vsel %vm305_vm5, %v164_v13, %v304_v18 }
  0xf0   :  { %v308_v25 = vsel %vm307_vm6, %v171_v17, %v306_v23 }
  0xf1   :  { %214 = vrot.lane.b32.xlu0 %v200_v22, %s378_s0  ;;  %v310_v26 = vsel %vm309_vm7, %v178_v21, %v308_v25 }
  0xf2   :  { %v473_v27 = vsel %vm311_vm8, %v185_v24, %v310_v26 }
 0x14e   :  { %v207_v28 = vpop.permute.xlu1 %206 }
 0x14f   :  { %v228_v30 = vadd.f32 %v418_v5, %v207_v28 }
 0x151   :  { %v249_v33 = vsel %vm234_vm9, %v228_v30, -inf }
 0x152   :  { %v209_v29 = vpop.permute.xlu1 %208  ;;  %v250_v36 = vrot.slane %v249_v33, 4 }
 0x153   :  { %v229_v31 = vadd.f32 %v433_v14, %v209_v29 }
 0x154   :  { %v251_v42 = vmax.f32 %v249_v33, %v250_v36 }
 0x155   :  { %v256_v35 = vsel %vm234_vm9, %v229_v31, -inf }
 0x156   :  { %v213_v32 = vpop.permute.xlu1 %212  ;;  %v257_v39 = vrot.slane %v256_v35, 4  ;;  %v252_v49 = vrot.slane %v251_v42, 2 }
 0x157   :  { %v231_v34 = vadd.f32 %v213_v32, %v441_v19  ;;  %v203_v38 = vpop.permute.xlu0 %202 }
 0x158   :  { %v226_v5 = vadd.f32 %v203_v38, %v424_v8  ;;  %v258_v45 = vmax.f32 %v256_v35, %v257_v39  ;;  %v253_v58 = vmax.f32 %v251_v42, %v252_v49 }
 0x159   :  { %v270_v40 = vsel %vm234_vm9, %v231_v34, -inf }
 0x15a   :  { %v217_v37 = vpop.permute.xlu1 %216  ;;  %v235_v14 = vsel %vm234_vm9, %v226_v5, -inf  ;;  %v271_v43 = vrot.slane %v270_v40, 4  ;;  %v259_v53 = vrot.slane %v258_v45, 2  ;;  %v254_v7 = vrot.slane %v253_v58, 1  ;;  %v354_v5 = vld [vmem:[%s509_s2] ss:$0 sm:$0xff] }
 0x15b   :  { %v233_v41 = vadd.f32 %v435_v15, %v217_v37  ;;  %v236_v44 = vrot.slane %v235_v14, 4  ;;  %v205_v46 = vpop.permute.xlu0 %204 }
 0x15c   :  { %v227_v47 = vadd.f32 %v205_v46, %v444_v20  ;;  %v272_v51 = vmax.f32 %v270_v40, %v271_v43  ;;  %v260_v20 = vmax.f32 %v258_v45, %v259_v53  ;;  %v255_v24 = vmax.f32 %v253_v58, %v254_v7 }
 0x15d   :  { %v284_v19 = vsel %vm234_vm9, %v233_v41, -inf  ;;  %v237_v48 = vmax.f32 %v235_v14, %v236_v44 }
 0x15e   :  { %v242_v50 = vsel %vm234_vm9, %v227_v47, -inf  ;;  %v285_v52 = vrot.slane %v284_v19, 4  ;;  %v273_v59 = vrot.slane %v272_v51, 2  ;;  %v261_v12 = vrot.slane %v260_v20, 1 }
 0x15f   :  { %v238_v15 = vrot.slane %v237_v48, 2  ;;  %v243_v8 = vrot.slane %v242_v50, 4  ;;  %v211_v54 = vpop.permute.xlu0 %210 }
 0x160   :  { %v230_v55 = vadd.f32 %v211_v54, %v426_v9  ;;  %v286_v61 = vmax.f32 %v284_v19, %v285_v52  ;;  %v274_v10 = vmax.f32 %v272_v51, %v273_v59 }
 0x161   :  { %v239_v56 = vmax.f32 %v237_v48, %v238_v15  ;;  %v244_v57 = vmax.f32 %v242_v50, %v243_v8 }
 0x162   :  { %v263_v60 = vsel %vm234_vm9, %v230_v55, -inf  ;;  %v287_v11 = vrot.slane %v286_v61, 2  ;;  %v275_v25 = vrot.slane %v274_v10, 1 }
 0x163   :  { %v245_v62 = vrot.slane %v244_v57, 2  ;;  %v264_v63 = vrot.slane %v263_v60, 4  ;;  %v215_v0 = vpop.permute.xlu0 %214  ;;  %v240_v2 = vrot.slane %v239_v56, 1 }
 0x164   :  { %v232_v1 = vadd.f32 %v420_v6, %v215_v0  ;;  %v288_v26 = vmax.f32 %v286_v61, %v287_v11  ;;  %v262_v6 = vmax.f32 %v260_v20, %v261_v12  ;;  %v276_v35 = vmax.f32 %v274_v10, %v275_v25 }
 0x165   :  { %v246_v3 = vmax.f32 %v244_v57, %v245_v62  ;;  %v265_v4 = vmax.f32 %v263_v60, %v264_v63  ;;  %v241_v18 = vmax.f32 %v239_v56, %v240_v2 }
 0x166   :  { %v277_v9 = vsel %vm234_vm9, %v232_v1, -inf  ;;  %v289_v36 = vrot.slane %v288_v26, 1 }
 0x167   :  { %v247_v13 = vrot.slane %v246_v3, 1  ;;  %v266_v16 = vrot.slane %v265_v4, 2  ;;  %v278_v17 = vrot.slane %v277_v9, 4 }
 0x168   :  { %v290_v41 = vmax.f32 %v288_v26, %v289_v36 }
 0x169   :  { %v248_v21 = vmax.f32 %v246_v3, %v247_v13  ;;  %v267_v22 = vmax.f32 %v265_v4, %v266_v16  ;;  %v279_v23 = vmax.f32 %v277_v9, %v278_v17 }
 0x16b   :  { %v322_v28 = vsel %vm299_vm2, %v248_v21, %v241_v18  ;;  %v268_v29 = vrot.slane %v267_v22, 1  ;;  %v280_v30 = vrot.slane %v279_v23, 2 }
 0x16c   :  { %v323_v31 = vsel %vm301_vm3, %v255_v24, %v322_v28 }
 0x16d   :  { %v324_v32 = vsel %vm303_vm4, %v262_v6, %v323_v31  ;;  %v269_v33 = vmax.f32 %v267_v22, %v268_v29  ;;  %v281_v34 = vmax.f32 %v279_v23, %v280_v30 }
 0x16f   :  { %v325_v37 = vsel %vm305_vm5, %v269_v33, %v324_v32  ;;  %v282_v38 = vrot.slane %v281_v34, 1 }
 0x170   :  { %v326_v39 = vsel %vm307_vm6, %v276_v35, %v325_v37 }
 0x171   :  { %v283_v40 = vmax.f32 %v281_v34, %v282_v38 }
 0x173   :  { %v327_v42 = vsel %vm309_vm7, %v283_v40, %v326_v39 }
 0x174   :  { %v328_v14 = vsel %vm311_vm8, %v290_v41, %v327_v42 }
 0x175   :  { %v330_v43 = vsel %vm129_vm1, %v473_v27, %v328_v14 }
 0x176   :  { %v338_v44 = vadd.f32 %v354_v5, %v330_v43 }
 0x178   :  { %v339_v45 = vmax.f32 %v338_v44, 0.0 }
 0x17a   :  { %340 = vst.msk [vmem:[%s510_s3] sm:$0xff] %vm51_vm0, %v339_v45 }

// kernel: deepjit_forward.3
= control target key start
LH: loop header
LB: loop body
LE: loop exit
PB: predicated region body
PF: predicated region fallthrough
CT: control target
= control target key end

     0   :  { %vm79_vm0 = vcmask 130048   ;;  %vm201_vm1 = vcmask 64512   ;;  %vm290_vm2 = vcmask 1046528   ;;  %vm461_vm3 = vcmask 1041409   ;;  %s781_s1 = inlined_call_operand.vmem [shape: bf16[16,24], index: 1, kind: input, shape index: {}]   ;;  %s782_s0 = inlined_call_operand.vmem [shape: bf16[8,16,16], index: 0, kind: input, shape index: {}]   ;;  %s783_s2 = inlined_call_operand.vmem [shape: f32[1,16], index: 2, kind: input, shape index: {}]   ;;  %s784_s3 = inlined_call_operand.vmem [shape: f32[8,16], index: 3, kind: output, shape index: {}]  }
   0x1   :  { %v555_v0 = vld [vmem:[%s781_s1] sm:$0xff]   ;;  %v558_v3 = vld [vmem:[%s782_s0 + $0x8] sm:$0xff]   ;;  %v560_v5 = vld [vmem:[%s782_s0 + $0x10] sm:$0xff]   ;;  %vm463_vm4 = vcmask 1042434   ;;  %vm465_vm5 = vcmask 1043459   ;;  %vm467_vm6 = vcmask 1044484  }
   0x2   :  { %v556_v1 = vld [vmem:[%s782_s0] sm:$0xff]   ;;  %534 = vmatprep.subr.bf16.mxu0 %v555_v0  ;;  %552 = vmatprep.subr.bf16.mxu1 %v555_v0  ;;  %v559_v4 = vld [vmem:[%s782_s0 + $0x28] sm:$0xff]   ;;  %v562_v6 = vld [vmem:[%s782_s0 + $0x30] sm:$0xff]   ;;  %vm469_vm7 = vcmask 1045509   ;;  %vm471_vm8 = vcmask 1046534   ;;  %vm473_vm9 = vcmask 1047559  }
   0x3   :  { %v557_v2 = vld [vmem:[%s782_s0 + $0x20] sm:$0xff]   ;;  %535 = vmatpush3.bf16.msra.mxu0 %v555_v0  ;;  %553 = vmatpush3.bf16.msra.mxu1 %v555_v0  ;;  %v561_v7 = vld [vmem:[%s782_s0 + $0x18] sm:$0xff]   ;;  %vm381_vm10 = vcmask 129088   ;;  %vm379_vm11 = vcmask 130112  }
   0x4   :  { %536 = vmatprep.mubr.msk.bf16.mxu0 %vm79_vm0, %v556_v1  ;;  %544 = vmatprep.mubr.msk.bf16.mxu1 %vm79_vm0, %v557_v2  ;;  %v563_v8 = vld [vmem:[%s782_s0 + $0x38] sm:$0xff]   ;;  %s564_s0 = smov 120  }
   0x6   :  { %537 = vmatmul.mubr.msk.bf16.vlgmr.msra.gmra.mrb[0].mxu0 %vm79_vm0, %v558_v3  ;;  %545 = vmatmul.mubr.msk.bf16.vlgmr.msra.gmra.mrb[0].mxu1 %vm79_vm0, %v559_v4 }
   0x7   :  { %540 = vmatprep.mubr.msk.bf16.mxu0 %vm79_vm0, %v560_v5  ;;  %548 = vmatprep.mubr.msk.bf16.mxu1 %vm79_vm0, %v562_v6 }
   0xe   :  { %541 = vmatmul.mubr.msk.bf16.gmra.mrb[4].mxu0 %vm79_vm0, %v561_v7  ;;  %549 = vmatmul.mubr.msk.bf16.gmra.mrb[4].mxu1 %vm79_vm0, %v563_v8 }
  0xd9   :  { %v620_v9 = vpop.f32.mrb[0].mxu0  ;;  %v622_v10 = vpop.f32.mrb[0].mxu1 }
  0xda   :  { %v211_v11 = vsel %vm201_vm1, %v620_v9, -inf  ;;  %v294_v12 = vrot.slane %v620_v9, 1  ;;  %v247_v13 = vsel %vm201_vm1, %v622_v10, -inf  ;;  %v306_v14 = vrot.slane %v622_v10, 1  ;;  %v630_v15 = vpop.f32.mrb[1].mxu0  ;;  %v632_v16 = vpop.f32.mrb[1].mxu1 }
  0xdb   :  { %v202_v17 = vsel %vm201_vm1, %v630_v15, -inf  ;;  %v291_v18 = vrot.slane %v630_v15, 1  ;;  %v238_v19 = vsel %vm201_vm1, %v632_v16, -inf  ;;  %v303_v20 = vrot.slane %v632_v16, 1  ;;  %v640_v21 = vpop.f32.mrb[2].mxu0  ;;  %v642_v22 = vpop.f32.mrb[2].mxu1 }
  0xdc   :  { %v212_v23 = vsel %vm201_vm1, %v640_v21, -inf  ;;  %v248_v24 = vsel %vm201_vm1, %v642_v22, -inf  ;;  %v307_v25 = vrot.slane %v642_v22, 1  ;;  %v649_v26 = vpop.f32.mrb[3].mxu0  ;;  %v651_v27 = vpop.f32.mrb[3].mxu1  ;;  %v295_v28 = vrot.slane %v640_v21, 1 }
  0xdd   :  { %v213_v29 = vmax.f32 %v211_v11, %v212_v23  ;;  %v249_v30 = vmax.f32 %v247_v13, %v248_v24  ;;  %v203_v31 = vsel %vm201_vm1, %v649_v26, -inf  ;;  %v239_v32 = vsel %vm201_vm1, %v651_v27, -inf }
  0xde   :  { %v204_v33 = vmax.f32 %v202_v17, %v203_v31  ;;  %v240_v34 = vmax.f32 %v238_v19, %v239_v32  ;;  %v304_v35 = vrot.slane %v651_v27, 1  ;;  %321 = vrot.lane.b32.xlu1 %v295_v28, %s564_s0  ;;  %v292_v36 = vrot.slane %v649_v26, 1 }
  0xdf   :  { %v214_v37 = vrot.slane %v213_v29, 4  ;;  %v250_v38 = vrot.slane %v249_v30, 4  ;;  %v308_v39 = vsel %vm290_vm2, %v306_v14, %v307_v25  ;;  %v296_v40 = vsel %vm290_vm2, %v294_v12, %v295_v28 }
  0xe0   :  { %v205_v41 = vrot.slane %v204_v33, 4  ;;  %v241_v42 = vrot.slane %v240_v34, 4  ;;  %317 = vrot.lane.b32.xlu0 %v292_v36, %s564_s0  ;;  %v293_v43 = vsel %vm290_vm2, %v291_v18, %v292_v36  ;;  %v305_v44 = vsel %vm290_vm2, %v303_v20, %v304_v35 }
  0xe1   :  { %v215_v45 = vmax.f32 %v213_v29, %v214_v37  ;;  %v251_v46 = vmax.f32 %v249_v30, %v250_v38  ;;  %v666_v47 = vpop.f32.mrb[4].mxu0  ;;  %v668_v48 = vpop.f32.mrb[4].mxu1 }
  0xe2   :  { %v206_v49 = vmax.f32 %v204_v33, %v205_v41  ;;  %v242_v50 = vmax.f32 %v240_v34, %v241_v42  ;;  %v229_v51 = vsel %vm201_vm1, %v666_v47, -inf  ;;  %337 = vrot.lane.b32.xlu1 %v307_v25, %s564_s0  ;;  %v673_v52 = vpop.f32.mrb[5].mxu0  ;;  %v675_v53 = vpop.f32.mrb[5].mxu1  ;;  %v300_v4 = vrot.slane %v666_v47, 1 }
  0xe3   :  { %v216_v54 = vrot.slane %v215_v45, 2  ;;  %v252_v55 = vrot.slane %v251_v46, 2  ;;  %v220_v56 = vsel %vm201_vm1, %v673_v52, -inf  ;;  %v679_v57 = vpop.f32.mrb[6].mxu0  ;;  %v681_v58 = vpop.f32.mrb[6].mxu1  ;;  %v297_v5 = vrot.slane %v673_v52, 1 }
  0xe4   :  { %v207_v59 = vrot.slane %v206_v49, 2  ;;  %v243_v60 = vrot.slane %v242_v50, 2  ;;  %335 = vrot.lane.b32.xlu0 %v308_v39, %s564_s0  ;;  %v230_v61 = vsel %vm201_vm1, %v679_v57, -inf  ;;  %v686_v62 = vpop.f32.mrb[7].mxu0  ;;  %v688_v63 = vpop.f32.mrb[7].mxu1  ;;  %v301_v12 = vrot.slane %v679_v57, 1 }
  0xe5   :  { %v217_v0 = vmax.f32 %v215_v45, %v216_v54  ;;  %v231_v1 = vmax.f32 %v229_v51, %v230_v61  ;;  %v221_v2 = vsel %vm201_vm1, %v686_v62, -inf  ;;  %v253_v8 = vmax.f32 %v251_v46, %v252_v55 }
  0xe6   :  { %v208_v3 = vmax.f32 %v206_v49, %v207_v59  ;;  %v222_v6 = vmax.f32 %v220_v56, %v221_v2  ;;  %319 = vrot.lane.b32.xlu1 %v296_v40, %s564_s0  ;;  %v244_v14 = vmax.f32 %v242_v50, %v243_v60  ;;  %v298_v18 = vrot.slane %v686_v62, 1 }
  0xe7   :  { %v218_v7 = vrot.slane %v217_v0, 1  ;;  %v232_v11 = vrot.slane %v231_v1, 4  ;;  %v265_v23 = vsel %vm201_vm1, %v668_v48, -inf  ;;  %v256_v24 = vsel %vm201_vm1, %v675_v53, -inf }
  0xe8   :  { %v209_v13 = vrot.slane %v208_v3, 1  ;;  %v223_v17 = vrot.slane %v222_v6, 4  ;;  %315 = vrot.lane.b32.xlu0 %v293_v43, %s564_s0  ;;  %v312_v29 = vrot.slane %v668_v48, 1  ;;  %v309_v30 = vrot.slane %v675_v53, 1 }
  0xe9   :  { %v219_v19 = vmax.f32 %v217_v0, %v218_v7  ;;  %v233_v20 = vmax.f32 %v231_v1, %v232_v11  ;;  %v266_v32 = vsel %vm201_vm1, %v681_v58, -inf  ;;  %v313_v33 = vrot.slane %v681_v58, 1 }
  0xea   :  { %v210_v25 = vmax.f32 %v208_v3, %v209_v13  ;;  %v224_v28 = vmax.f32 %v222_v6, %v223_v17  ;;  %333 = vrot.lane.b32.xlu1 %v304_v35, %s564_s0  ;;  %v257_v34 = vsel %vm201_vm1, %v688_v63, -inf  ;;  %v267_v38 = vmax.f32 %v265_v23, %v266_v32 }
  0xeb   :  { %v234_v31 = vrot.slane %v233_v20, 2  ;;  %v258_v39 = vmax.f32 %v256_v24, %v257_v34  ;;  %v310_v41 = vrot.slane %v688_v63, 1  ;;  %v302_v35 = vsel %vm290_vm2, %v300_v4, %v301_v12 }
  0xec   :  { %v462_v36 = vsel %vm461_vm3, %v219_v19, %v210_v25  ;;  %v225_v37 = vrot.slane %v224_v28, 2  ;;  %331 = vrot.lane.b32.xlu0 %v305_v44, %s564_s0  ;;  %v299_v42 = vsel %vm290_vm2, %v297_v5, %v298_v18  ;;  %v268_v45 = vrot.slane %v267_v38, 4 }
  0xed   :  { %v235_v40 = vmax.f32 %v233_v20, %v234_v31  ;;  %v259_v46 = vrot.slane %v258_v39, 4  ;;  %v314_v49 = vsel %vm290_vm2, %v312_v29, %v313_v33  ;;  %v311_v51 = vsel %vm290_vm2, %v309_v30, %v310_v41 }
  0xee   :  { %v226_v43 = vmax.f32 %v224_v28, %v225_v37  ;;  %329 = vrot.lane.b32.xlu1 %v301_v12, %s564_s0  ;;  %v245_v54 = vrot.slane %v244_v14, 1  ;;  %v269_v44 = vmax.f32 %v267_v38, %v268_v45  ;;  %v254_v59 = vrot.slane %v253_v8, 1 }
  0xef   :  { %v236_v50 = vrot.slane %v235_v40, 1  ;;  %v260_v56 = vmax.f32 %v258_v39, %v259_v46 }
  0xf0   :  { %v227_v55 = vrot.slane %v226_v43, 1  ;;  %327 = vrot.lane.b32.xlu0 %v302_v35, %s564_s0  ;;  %v270_v61 = vrot.slane %v269_v44, 2  ;;  %v246_v2 = vmax.f32 %v244_v14, %v245_v54  ;;  %v255_v6 = vmax.f32 %v253_v8, %v254_v59 }
  0xf1   :  { %v261_v0 = vrot.slane %v260_v56, 2  ;;  %v237_v1 = vmax.f32 %v235_v40, %v236_v50 }
  0xf2   :  { %v228_v60 = vmax.f32 %v226_v43, %v227_v55  ;;  %325 = vrot.lane.b32.xlu1 %v298_v18, %s564_s0  ;;  %v271_v4 = vmax.f32 %v269_v44, %v270_v61 }
  0xf3   :  { %v262_v5 = vmax.f32 %v260_v56, %v261_v0 }
  0xf4   :  { %v464_v3 = vsel %vm463_vm4, %v228_v60, %v462_v36  ;;  %323 = vrot.lane.b32.xlu0 %v299_v42, %s564_s0  ;;  %v272_v11 = vrot.slane %v271_v4, 1 }
  0xf5   :  { %v466_v7 = vsel %vm465_vm5, %v237_v1, %v464_v3  ;;  %v263_v12 = vrot.slane %v262_v5, 1 }
  0xf6   :  { %v468_v13 = vsel %vm467_vm6, %v246_v2, %v466_v7  ;;  %341 = vrot.lane.b32.xlu1 %v310_v41, %s564_s0  ;;  %v273_v18 = vmax.f32 %v271_v4, %v272_v11 }
  0xf7   :  { %v470_v17 = vsel %vm469_vm7, %v255_v6, %v468_v13  ;;  %v264_v14 = vmax.f32 %v262_v5, %v263_v12 }
  0xf8   :  { %339 = vrot.lane.b32.xlu0 %v311_v51, %s564_s0 }
  0xf9   :  { %v472_v19 = vsel %vm471_vm8, %v264_v14, %v470_v17 }
  0xfa   :  { %345 = vrot.lane.b32.xlu1 %v313_v33, %s564_s0  ;;  %v730_v8 = vsel %vm473_vm9, %v273_v18, %v472_v19 }
  0xfc   :  { %343 = vrot.lane.b32.xlu0 %v314_v49, %s564_s0 }
 0x150   :  { %v322_v20 = vpop.permute.xlu1 %321 }
 0x151   :  { %v366_v29 = vadd.f32 %v640_v21, %v322_v20 }
 0x152   :  { %v318_v23 = vpop.permute.xlu0 %317 }
 0x153   :  { %v364_v33 = vadd.f32 %v318_v23, %v649_v26 }
 0x154   :  { %v338_v24 = vpop.permute.xlu1 %337 }
 0x155   :  { %v374_v25 = vadd.f32 %v642_v22, %v338_v24  ;;  %v391_v22 = vsel %vm381_vm10, %v366_v29, -inf  ;;  %v382_v35 = vsel %vm381_vm10, %v364_v33, -inf }
 0x156   :  { %v336_v28 = vpop.permute.xlu0 %335 }
 0x157   :  { %v427_v30 = vsel %vm381_vm10, %v374_v25, -inf  ;;  %v373_v31 = vadd.f32 %v622_v10, %v336_v28 }
 0x158   :  { %v320_v32 = vpop.permute.xlu1 %319 }
 0x159   :  { %v426_v34 = vsel %vm379_vm11, %v373_v31, -inf  ;;  %v365_v36 = vadd.f32 %v620_v9, %v320_v32 }
 0x15a   :  { %v428_v37 = vmax.f32 %v426_v34, %v427_v30  ;;  %v316_v38 = vpop.permute.xlu0 %315 }
 0x15b   :  { %v390_v39 = vsel %vm379_vm11, %v365_v36, -inf  ;;  %v363_v40 = vadd.f32 %v316_v38, %v630_v15 }
 0x15c   :  { %v392_v21 = vmax.f32 %v390_v39, %v391_v22  ;;  %v334_v41 = vpop.permute.xlu1 %333 }
 0x15d   :  { %v380_v10 = vsel %vm379_vm11, %v363_v40, -inf  ;;  %v372_v26 = vadd.f32 %v334_v41, %v651_v27 }
 0x15e   :  { %v393_v42 = vrot.slane %v392_v21, 4  ;;  %v383_v43 = vmax.f32 %v380_v10, %v382_v35  ;;  %v332_v45 = vpop.permute.xlu0 %331 }
 0x15f   :  { %v418_v9 = vsel %vm381_vm10, %v372_v26, -inf  ;;  %v371_v46 = vadd.f32 %v332_v45, %v632_v16  ;;  %v429_v16 = vrot.slane %v428_v37, 4 }
 0x160   :  { %v394_v49 = vmax.f32 %v392_v21, %v393_v42  ;;  %v384_v50 = vrot.slane %v383_v43, 4  ;;  %v330_v51 = vpop.permute.xlu1 %329 }
 0x161   :  { %v417_v15 = vsel %vm379_vm11, %v371_v46, -inf  ;;  %v370_v54 = vadd.f32 %v679_v57, %v330_v51  ;;  %v430_v14 = vmax.f32 %v428_v37, %v429_v16 }
 0x162   :  { %v395_v55 = vrot.slane %v394_v49, 2  ;;  %v385_v44 = vmax.f32 %v383_v43, %v384_v50  ;;  %v419_v56 = vmax.f32 %v417_v15, %v418_v9  ;;  %v328_v59 = vpop.permute.xlu0 %327 }
 0x163   :  { %v369_v27 = vadd.f32 %v666_v47, %v328_v59  ;;  %v409_v1 = vsel %vm381_vm10, %v370_v54, -inf  ;;  %v431_v34 = vrot.slane %v430_v14, 2 }
 0x164   :  { %v396_v60 = vmax.f32 %v394_v49, %v395_v55  ;;  %v386_v61 = vrot.slane %v385_v44, 2  ;;  %v420_v0 = vrot.slane %v419_v56, 4  ;;  %v326_v2 = vpop.permute.xlu1 %325 }
 0x165   :  { %v408_v3 = vsel %vm379_vm11, %v369_v27, -inf  ;;  %v368_v4 = vadd.f32 %v326_v2, %v686_v62  ;;  %v432_v26 = vmax.f32 %v430_v14, %v431_v34 }
 0x166   :  { %v397_v5 = vrot.slane %v396_v60, 1  ;;  %v387_v6 = vmax.f32 %v385_v44, %v386_v61  ;;  %v324_v57 = vpop.permute.xlu0 %323  ;;  %v410_v7 = vmax.f32 %v408_v3, %v409_v1  ;;  %v421_v17 = vmax.f32 %v419_v56, %v420_v0 }
 0x167   :  { %v400_v11 = vsel %vm381_vm10, %v368_v4, -inf  ;;  %v367_v12 = vadd.f32 %v324_v57, %v673_v52  ;;  %v433_v15 = vrot.slane %v432_v26, 1  ;;  %v524_v57 = vld [vmem:[%s783_s2] ss:$0 sm:$0xff] }
 0x168   :  { %v398_v47 = vmax.f32 %v396_v60, %v397_v5  ;;  %v388_v13 = vrot.slane %v387_v6, 1  ;;  %v342_v18 = vpop.permute.xlu1 %341  ;;  %v411_v19 = vrot.slane %v410_v7, 4  ;;  %v422_v31 = vrot.slane %v421_v17, 2 }
 0x169   :  { %v399_v20 = vsel %vm379_vm11, %v367_v12, -inf  ;;  %v376_v23 = vadd.f32 %v342_v18, %v688_v63  ;;  %v434_v61 = vmax.f32 %v432_v26, %v433_v15 }
 0x16a   :  { %v389_v24 = vmax.f32 %v387_v6, %v388_v13  ;;  %v401_v62 = vmax.f32 %v399_v20, %v400_v11  ;;  %v340_v25 = vpop.permute.xlu0 %339  ;;  %v412_v28 = vmax.f32 %v410_v7, %v411_v19 }
 0x16b   :  { %v436_v29 = vsel %vm381_vm10, %v376_v23, -inf  ;;  %v375_v30 = vadd.f32 %v340_v25, %v675_v53  ;;  %v423_v53 = vmax.f32 %v421_v17, %v422_v31 }
 0x16c   :  { %v484_v52 = vsel %vm461_vm3, %v398_v47, %v389_v24  ;;  %v402_v32 = vrot.slane %v401_v62, 4  ;;  %v346_v33 = vpop.permute.xlu1 %345  ;;  %v413_v36 = vrot.slane %v412_v28, 2 }
 0x16d   :  { %v435_v37 = vsel %vm379_vm11, %v375_v30, -inf  ;;  %v378_v38 = vadd.f32 %v681_v58, %v346_v33  ;;  %v424_v49 = vrot.slane %v423_v53, 1 }
 0x16e   :  { %v403_v63 = vmax.f32 %v401_v62, %v402_v32  ;;  %v437_v22 = vmax.f32 %v435_v37, %v436_v29  ;;  %v344_v39 = vpop.permute.xlu0 %343  ;;  %v414_v40 = vmax.f32 %v412_v28, %v413_v36 }
 0x16f   :  { %v445_v21 = vsel %vm381_vm10, %v378_v38, -inf  ;;  %v377_v41 = vadd.f32 %v668_v48, %v344_v39  ;;  %v425_v48 = vmax.f32 %v423_v53, %v424_v49 }
 0x170   :  { %v404_v35 = vrot.slane %v403_v63, 2  ;;  %v438_v10 = vrot.slane %v437_v22, 4  ;;  %v415_v46 = vrot.slane %v414_v40, 1 }
 0x171   :  { %v444_v42 = vsel %vm379_vm11, %v377_v41, -inf }
 0x172   :  { %v405_v43 = vmax.f32 %v403_v63, %v404_v35  ;;  %v439_v45 = vmax.f32 %v437_v22, %v438_v10  ;;  %v446_v9 = vmax.f32 %v444_v42, %v445_v21  ;;  %v416_v56 = vmax.f32 %v414_v40, %v415_v46 }
 0x174   :  { %v406_v58 = vrot.slane %v405_v43, 1  ;;  %v440_v50 = vrot.slane %v439_v45, 2  ;;  %v447_v51 = vrot.slane %v446_v9, 4 }
 0x176   :  { %v407_v54 = vmax.f32 %v405_v43, %v406_v58  ;;  %v441_v55 = vmax.f32 %v439_v45, %v440_v50  ;;  %v448_v44 = vmax.f32 %v446_v9, %v447_v51 }
 0x178   :  { %v485_v59 = vsel %vm463_vm4, %v407_v54, %v484_v52  ;;  %v442_v27 = vrot.slane %v441_v55, 1  ;;  %v449_v60 = vrot.slane %v448_v44, 2 }
 0x179   :  { %v486_v0 = vsel %vm465_vm5, %v416_v56, %v485_v59 }
 0x17a   :  { %v487_v1 = vsel %vm467_vm6, %v425_v48, %v486_v0  ;;  %v443_v2 = vmax.f32 %v441_v55, %v442_v27  ;;  %v450_v16 = vmax.f32 %v448_v44, %v449_v60 }
 0x17b   :  { %v488_v3 = vsel %vm469_vm7, %v434_v61, %v487_v1 }
 0x17c   :  { %v489_v4 = vsel %vm471_vm8, %v443_v2, %v488_v3  ;;  %v451_v5 = vrot.slane %v450_v16, 1 }
 0x17e   :  { %v452_v6 = vmax.f32 %v450_v16, %v451_v5 }
 0x180   :  { %v490_v7 = vsel %vm473_vm9, %v452_v6, %v489_v4 }
 0x181   :  { %v492_v11 = vsel %vm201_vm1, %v730_v8, %v490_v7 }
 0x182   :  { %v500_v12 = vadd.f32 %v524_v57, %v492_v11 }
 0x184   :  { %v501_v47 = vmax.f32 %v500_v12, 0.0 }
 0x186   :  { %502 = vst.msk [vmem:[%s784_s3] sm:$0xff] %vm79_vm0, %v501_v47 }

// kernel: deepjit_forward.5
= control target key start
LH: loop header
LB: loop body
LE: loop exit
PB: predicated region body
PF: predicated region fallthrough
CT: control target
= control target key end

     0   :  { %v51_v0 = vlaneseq  ;;  %v498_v1 = vmov 0.0   ;;  %vm499_vm0 = vmmov 0   ;;  %v500_v3 = vmov 1983009808   ;;  %s624_s1 = inlined_call_operand.vmem [shape: bf16[16,24], index: 1, kind: input, shape index: {}]   ;;  %s625_s0 = inlined_call_operand.vmem [shape: bf16[2,4,16], index: 0, kind: input, shape index: {}]   ;;  %s626_s6 = inlined_call_operand.vmem [shape: bf16[16,32], index: 6, kind: input, shape index: {}]   ;;  %s627_s5 = inlined_call_operand.vmem [shape: bf16[16,32], index: 5, kind: input, shape index: {}]   ;;  %s628_s3 = inlined_call_operand.vmem [shape: bf16[2,16], index: 3, kind: input, shape index: {}]   ;;  %s629_s7 = inlined_call_operand.vmem [shape: bf16[13,32], index: 7, kind: input, shape index: {}]   ;;  %s630_s2 = inlined_call_operand.vmem [shape: f32[1,16], index: 2, kind: input, shape index: {}]   ;;  %s631_s4 = inlined_call_operand.vmem [shape: bf16[2,13], index: 4, kind: input, shape index: {}]   ;;  %s632_s9 = inlined_call_operand.vmem [shape: bf16[32,1], index: 9, kind: input, shape index: {}]   ;;  %s633_s10 = inlined_call_operand.<no memory space> [shape: f32[1,1], index: 10, kind: input, shape index: {}]   ;;  %s634_s8 = inlined_call_operand.vmem [shape: f32[1,32], index: 8, kind: input, shape index: {}]   ;;  %s635_s11 = inlined_call_operand.vmem [shape: f32[2,1], index: 11, kind: output, shape index: {}]  }
   0x1   :  { %451 = vmatprep.subr.bf16.mxu0 %v498_v1  ;;  %v488_v2 = vld [vmem:[%s624_s1] sm:$0xff]   ;;  %453 = vmatprep.mubr.msk.bf16.mxu0 %vm499_vm0, %v498_v1  ;;  %v49_v4 = vunpack.c.l.s4 %v500_v3  ;;  %vm61_vm1 = vcmask 130048   ;;  %vm108_vm2 = vcmask 60416   ;;  %vm135_vm3 = vcmask 124992  }
   0x2   :  { %v41_v5 = vld [vmem:[%s625_s0] sm:$0x3]  ;;  %v42_v6 = vld [vmem:[%s625_s0 + $0x2] sm:$0x3]  ;;  %v52_v7 = vshrl.u32 %v51_v0, 7  ;;  %457 = vmatprep.subr.bf16.mxu1 %v498_v1  ;;  %459 = vmatprep.mubr.msk.bf16.mxu1 %vm499_vm0, %v498_v1  ;;  %s501_s0 = smov 120  }
   0x3   :  { %452 = vmatpush3.bf16.msra.mxu0 %v488_v2  ;;  %v47_v8 = vcombine.low %v41_v5, %v42_v6  ;;  %v50_v9 = vunpack.c.0.s8 %v49_v4  ;;  %v489_v19 = vld [vmem:[%s626_s6] sm:$0xff]   ;;  %vm286_vm4 = vcmask 1045504   ;;  %vm152_vm5 = vcmask 1041409  }
   0x4   :  { %463 = vmatprep.subr.bf16.mxu0 %v498_v1  ;;  %v490_v20 = vld [vmem:[%s627_s5] sm:$0xff]   ;;  %458 = vmatpush3.bf16.msra.mxu1 %v489_v19  ;;  %vm159_vm6 = vcmask 64512   ;;  %vm287_vm7 = vcmask 1046528   ;;  %v502_v55 = vmov 65535   ;;  %vm282_vm8 = vcmask 105472  }
   0x5   :  { %v53_v10 = vsub.s32 %v50_v9, %v52_v7  ;;  %469 = vmatprep.subr.bf16.mxu1 %v498_v1  ;;  %v170_v21 = vld [vmem:[%s628_s3] sm:$0x1]  ;;  %v288_v56 = vsel %vm286_vm4, 4294967295, %v502_v55  ;;  %v493_v9 = vld [vmem:[%s632_s9 + $0x8] sm:$0xff]   ;;  %vm367_vm9 = vcmask 261120   ;;  %vm417_vm10 = vcmask 1024  }
   0x6   :  { %v427_v54 = vld [vmem:[%s630_s2] ss:$0 sm:$0xff]  ;;  %v289_v62 = vsel %vm287_vm7, %v288_v56, 0 }
   0x7   :  { %v54_v11 = vrot.slane %v47_v8, %v53_v10  ;;  %v491_v60 = vld [vmem:[%s629_s7] sm:$0x7f]   ;;  %v16_v10 = vstv %s633_s10 }
   0x8   :  { %v291_v0 = vand.u32 %v491_v60, %v289_v62  ;;  %v274_v3 = vld [vmem:[%s631_s4] sm:$0x1]  ;;  %17 = vst [vmem:[#allocation2] sm:$0x1] %v16_v10 }
   0x9   :  { %454 = vmatmul.mubr.msk.bf16.vlgmr.msra.gmra.mrb[0].mxu0 %vm61_vm1, %v54_v11  ;;  %v492_v8 = vld [vmem:[%s632_s9] sm:$0xff]  }
   0xa   :  { %465 = vmatprep.mubr.msk.bf16.mxu0 %vm499_vm0, %v498_v1  ;;  %464 = vmatpush3.bf16.msra.mxu0 %v490_v20 }
   0xb   :  { %475 = vmatprep.subr.bf16.mxu0 %v498_v1 }
  0x11   :  { %466 = vmatmul.mubr.msk.bf16.vlgmr.msra.gmra.mrb[4].mxu0 %vm61_vm1, %v170_v21 }
  0x12   :  { %479 = vmatprep.mubr.msk.bf16.mxu0 %vm499_vm0, %v498_v1  ;;  %476 = vmatpush3.bf16.msra.mxu0 %v492_v8 }
  0x13   :  { %477 = vmatprep.subr.bf16.mxu0 %v498_v1 }
  0x16   :  { %478 = vmatpush3.bf16.msra.mxu0 %v493_v9 }
  0xdc   :  { %v99_v12 = vpop.f32.mrb[0].mxu0 }
  0xdd   :  { %v106_v13 = vcombine.high %v99_v12, %v99_v12  ;;  %v455_v14 = vpop.f32.mrb[1].mxu0  ;;  %v425_v15 = vrot.slane %v99_v12, 9  ;;  %v109_v23 = vsel %vm108_vm2, %v99_v12, -inf }
  0xde   :  { %v102_v16 = vpop.f32.mrb[2].mxu0  ;;  %v110_v25 = vrot.slane %v109_v23, 4 }
  0xdf   :  { %127 = vrot.lane.b32.xlu0 %v425_v15, %s501_s0  ;;  %v456_v17 = vpop.f32.mrb[3].mxu0  ;;  %v426_v18 = vrot.slane %v106_v13, 9  ;;  %v116_v22 = vsel %vm108_vm2, %v106_v13, -inf }
  0xe0   :  { %v117_v24 = vrot.slane %v116_v22, 4  ;;  %v111_v29 = vmax.f32 %v109_v23, %v110_v25 }
  0xe2   :  { %v118_v26 = vmax.f32 %v116_v22, %v117_v24  ;;  %v112_v35 = vrot.slane %v111_v29, 2  ;;  %v435_v24 = vld [vmem:[#allocation2] ss:$0 sm:$0xff] }
  0xe3   :  { %129 = vrot.lane.b32.xlu0 %v426_v18, %s501_s0 }
  0xe4   :  { %v119_v31 = vrot.slane %v118_v26, 2  ;;  %v113_v41 = vmax.f32 %v111_v29, %v112_v35  ;;  %v268_v4 = vpop.f32.mrb[4].mxu0 }
  0xe5   :  { %v467_v5 = vpop.f32.mrb[5].mxu0 }
  0xe6   :  { %v120_v38 = vmax.f32 %v118_v26, %v119_v31  ;;  %v114_v46 = vrot.slane %v113_v41, 1  ;;  %v271_v6 = vpop.f32.mrb[6].mxu0 }
  0xe7   :  { %v468_v7 = vpop.f32.mrb[7].mxu0 }
  0xe8   :  { %v121_v44 = vrot.slane %v120_v38, 1  ;;  %v115_v51 = vmax.f32 %v113_v41, %v114_v46 }
  0xea   :  { %v122_v49 = vmax.f32 %v120_v38, %v121_v44 }
  0xec   :  { %v153_v57 = vsel %vm152_vm5, %v122_v49, %v115_v51 }
 0x151   :  { %v128_v27 = vpop.permute.xlu0 %127 }
 0x152   :  { %v133_v28 = vadd.f32 %v128_v27, %v99_v12 }
 0x154   :  { %v136_v30 = vsel %vm135_vm3, %v133_v28, -inf }
 0x155   :  { %v137_v32 = vrot.slane %v136_v30, 4  ;;  %v130_v33 = vpop.permute.xlu0 %129 }
 0x156   :  { %v134_v34 = vadd.f32 %v130_v33, %v106_v13 }
 0x157   :  { %v138_v36 = vmax.f32 %v136_v30, %v137_v32 }
 0x158   :  { %v143_v37 = vsel %vm135_vm3, %v134_v34, -inf }
 0x159   :  { %v139_v39 = vrot.slane %v138_v36, 2  ;;  %v144_v40 = vrot.slane %v143_v37, 4 }
 0x15b   :  { %v140_v42 = vmax.f32 %v138_v36, %v139_v39  ;;  %v145_v43 = vmax.f32 %v143_v37, %v144_v40 }
 0x15d   :  { %v146_v45 = vrot.slane %v145_v43, 2  ;;  %v141_v47 = vrot.slane %v140_v42, 1 }
 0x15f   :  { %v147_v48 = vmax.f32 %v145_v43, %v146_v45  ;;  %v142_v52 = vmax.f32 %v140_v42, %v141_v47 }
 0x161   :  { %v148_v50 = vrot.slane %v147_v48, 1 }
 0x163   :  { %v149_v53 = vmax.f32 %v147_v48, %v148_v50 }
 0x165   :  { %v157_v58 = vsel %vm152_vm5, %v149_v53, %v142_v52 }
 0x166   :  { %v160_v59 = vsel %vm159_vm6, %v153_v57, %v157_v58 }
 0x167   :  { %v168_v61 = vadd.f32 %v427_v54, %v160_v59 }
 0x169   :  { %v169_v63 = vmax.f32 %v168_v61, 0.0 }
 0x16b   :  { %v173_v2 = vpack.c.bf16 %v169_v63, %v169_v63 }
 0x16d   :  { %460 = vmatmul.mubr.msk.bf16.vlgmr.msra.gmra.mrb[0].mxu1 %vm61_vm1, %v173_v2 }
 0x16e   :  { %470 = vmatpush3.bf16.msra.mxu1 %v291_v0  ;;  %471 = vmatprep.mubr.msk.bf16.mxu1 %vm499_vm0, %v498_v1  ;;  %v434_v1 = vld [vmem:[%s634_s8] ss:$0 sm:$0xff] }
 0x175   :  { %472 = vmatmul.mubr.msk.bf16.vlgmr.msra.gmra.mrb[4].mxu1 %vm282_vm8, %v274_v3 }
 0x240   :  { %v219_v11 = vpop.f32.mrb[0].mxu1 }
 0x241   :  { %v269_v12 = vadd.f32 %v268_v4, %v219_v11  ;;  %v461_v13 = vpop.f32.mrb[1].mxu1 }
 0x242   :  { %v222_v14 = vpop.f32.mrb[2].mxu1 }
 0x243   :  { %v462_v15 = vpop.f32.mrb[3].mxu1 }
 0x248   :  { %v327_v16 = vpop.f32.mrb[4].mxu1 }
 0x249   :  { %v333_v17 = vadd.f32 %v327_v16, %v269_v12  ;;  %v473_v18 = vpop.f32.mrb[5].mxu1 }
 0x24a   :  { %v330_v19 = vpop.f32.mrb[6].mxu1 }
 0x24b   :  { %v341_v20 = vadd.f32 %v434_v1, %v333_v17  ;;  %v474_v21 = vpop.f32.mrb[7].mxu1 }
 0x24d   :  { %v342_v22 = vmax.f32 %v341_v20, 0.0 }
 0x24f   :  { %v343_v23 = vpack.c.bf16 %v342_v22, %v342_v22 }
 0x251   :  { %480 = vmatmul.mubr.msk.bf16.vlgmr.msra.gmra.mrb[8].mxu0 %vm367_vm9, %v343_v23 }
 0x324   :  { %v405_v25 = vpop.f32.mrb[8].mxu0 }
 0x325   :  { %v406_v26 = vadd.f32 %v435_v24, %v405_v25  ;;  %v481_v27 = vpop.f32.mrb[9].mxu0 }
 0x326   :  { %v408_v28 = vpop.f32.mrb[10].mxu0 }
 0x327   :  { %v439_v29 = vmul.f32 -1.442695, %v406_v26  ;;  %v482_v30 = vpop.f32.mrb[11].mxu0 }
 0x329   :  { %494 = vpow2.f32 %v439_v29 }
 0x333   :  { %v495_v31 = vpop.eup %494 }
 0x334   :  { %v414_v32 = vadd.f32 1.0, %v495_v31 }
 0x336   :  { %496 = vrcp.f32 %v414_v32 }
 0x340   :  { %v497_v33 = vpop.eup %496 }
 0x341   :  { %418 = vst.msk [vmem:[%s635_s11] sm:$0x3] %vm417_vm10, %v497_v33 }

</bundles_post_ra>
